<compile_context>
chip_gen: v7x
topology: tpu7x:2x2x1
jax: 0.10.0
libtpu: 0.0.40
codegen_flags: <defaults>
</compile_context>

<pallas_src>
import functools

import jax
import jax.numpy as jnp
from jax.experimental import pallas as pl
from jax.experimental.pallas import tpu as pltpu

_MIB = 1024 * 1024


def _round_up(v, m):
    return ((v + m - 1) // m) * m


def _tpu_vmem_bytes():
    """Physical VMEM per TensorCore; conservative 64 MiB fallback (v7x)."""
    vmem = 64 * _MIB
    try:
        info = pltpu.get_tpu_info()
        for attr in ("vmem_capacity_bytes", "vmem_size_bytes", "vmem_bytes"):
            v = getattr(info, attr, None)
            if v:
                vmem = int(v)
                break
    except Exception:
        pass
    return vmem


# ----------------------------- kernels ------------------------------------ #

def _linear_relu_fused_kernel(x_ref, w_ref, b_ref, o_ref):
    # Whole K resident in VMEM: one MXU pass, bias + ReLU fused in-register.
    acc = jnp.dot(x_ref[...], w_ref[...], preferred_element_type=jnp.float32)
    o_ref[...] = jnp.maximum(acc + b_ref[...], 0.0).astype(o_ref.dtype)


def _linear_relu_acc_kernel(x_ref, w_ref, b_ref, o_ref, acc_ref):
    # K split across the grid (only used when the W slab does not fit VMEM).
    k = pl.program_id(2)
    nk = pl.num_programs(2)
    part = jnp.dot(x_ref[...], w_ref[...], preferred_element_type=jnp.float32)

    @pl.when(k == 0)
    def _():
        acc_ref[...] = part                       # no zero-init + add

    @pl.when(jnp.logical_and(k > 0, k < nk - 1))
    def _():
        acc_ref[...] += part

    @pl.when(k == nk - 1)
    def _():
        # Fuse last partial + bias + ReLU; skip the final acc writeback.
        out = jnp.maximum(acc_ref[...] + part + b_ref[...], 0.0)
        o_ref[...] = out.astype(o_ref.dtype)


# ------------------------------ planning ---------------------------------- #

def _plan(batch, in_size, out_size, compute_dtype, out_dtype,
          tile_m=None, tile_n=None, tile_k=None):
    in_elt = jnp.dtype(compute_dtype).itemsize
    out_elt = jnp.dtype(out_dtype).itemsize

    Bp0 = _round_up(batch, 8)
    Kp0 = _round_up(in_size, 128)
    Np0 = _round_up(out_size, 128)

    phys_vmem = _tpu_vmem_bytes()
    if phys_vmem <= 64 * _MIB:
        # v7x-class: 64 MiB physical VMEM per TC, 2 TCs per chip -> headroom.
        vmem_cap = 52 * _MIB
        num_cores = 2
    else:
        # v5e / v6e: 128 MiB physical VMEM, 1 TC -> use most of it.
        vmem_cap = min(phys_vmem - 32 * _MIB, 96 * _MIB)
        num_cores = 1
    budget = int(vmem_cap * 0.85)

    auto = tile_m is None and tile_n is None and tile_k is None
    if tile_m is None:
        tile_m = min(512, Bp0)
    if tile_k is None:
        tile_k = Kp0            # collapse K: each W block loaded once per M tile
    if tile_n is None:
        tile_n = Np0            # keep the full output row resident

    tile_m = _round_up(min(tile_m, Bp0), 8)
    tile_n = _round_up(min(tile_n, Np0), 128)
    tile_k = _round_up(min(tile_k, Kp0), 128)

    def _ws(tm, tn, tk):
        gk = _round_up(Kp0, tk) // tk
        s = (2 * tm * tk * in_elt        # x tiles, double-buffered
             + 2 * tk * tn * in_elt      # w tiles, double-buffered
             + 2 * 8 * tn * 4            # bias row (8-sublane padded), dbl-buf
             + 2 * tm * tn * out_elt)    # out tiles, double-buffered
        if gk > 1:
            s += tm * tn * 4             # f32 accumulator scratch
        return s

    if auto:
        # Megacore (2 TCs): guarantee >= 2 parallel blocks when batch is small.
        if (num_cores >= 2
                and _round_up(Bp0, tile_m) // tile_m == 1
                and tile_n >= 256):
            tile_n = _round_up(-(-tile_n // 2), 128)

        # Shrink tiles only if the working set exceeds the VMEM budget.
        # Prefer shrinking N, then M; split K last (it reintroduces the loop).
        while _ws(tile_m, tile_n, tile_k) > budget:
            if tile_n > 256:
                tile_n = _round_up(tile_n // 2, 128)
            elif tile_m > 256:
                tile_m = _round_up(max(256, tile_m // 2), 8)
            elif tile_k > 512:
                tile_k = _round_up(tile_k // 2, 128)
            elif tile_n > 128:
                tile_n = 128
            elif tile_k > 128:
                tile_k = _round_up(tile_k // 2, 128)
            elif tile_m > 8:
                tile_m = _round_up(max(8, tile_m // 2), 8)
            else:
                break

    Bp = _round_up(Bp0, tile_m)
    Kp = _round_up(Kp0, tile_k)
    Np = _round_up(Np0, tile_n)
    grid = (Bp // tile_m, Np // tile_n, Kp // tile_k)

    ws_final = _ws(tile_m, tile_n, tile_k)
    vmem_limit = int(min(vmem_cap, max(ws_final * 5 // 4, 16 * _MIB)))

    return dict(Bp=Bp, Kp=Kp, Np=Np,
                tile_m=tile_m, tile_n=tile_n, tile_k=tile_k,
                grid=grid, vmem_limit=vmem_limit,
                in_elt=in_elt, out_elt=out_elt)


# ------------------------------ wrapper ------------------------------------ #

def make_autoencoder_forward(w, b, batch_size, *, compute_dtype=jnp.float32,
                             out_dtype=None, tile_m=None, tile_n=None,
                             tile_k=None):
    """Build a jitted eval-mode AutoEncoder forward: relu(x @ w + b).

    w: (input_size, output_size)   PyTorch Linear weight, pre-transposed.
    b: (output_size,)
    Parameter cast + pad happen ONCE here (not per call).
    """
    K, N = w.shape
    assert b.shape == (N,)
    out_dtype = jnp.dtype(out_dtype) if out_dtype is not None else jnp.dtype(w.dtype)

    plan = _plan(batch_size, K, N, compute_dtype, out_dtype,
                 tile_m, tile_n, tile_k)
    Bp, Kp, Np = plan["Bp"], plan["Kp"], plan["Np"]
    tm, tn, tk = plan["tile_m"], plan["tile_n"], plan["tile_k"]
    grid_m, grid_n, grid_k = plan["grid"]

    # Prepare parameters once (hoisted out of the per-call path).
    wp = jnp.pad(w.astype(compute_dtype), ((0, Kp - K), (0, Np - N)))
    bp = jnp.pad(b.astype(jnp.float32), ((0, Np - N),)).reshape(1, Np)

    # Advisory cost: W is streamed once per M tile, x once per N tile.
    cost = pl.CostEstimate(
        flops=2 * Bp * Kp * Np,
        transcendentals=0,
        bytes_accessed=int(grid_n * Bp * Kp * plan["in_elt"]
                           + grid_m * Kp * Np * plan["in_elt"]
                           + 8 * Np * 4
                           + Bp * Np * plan["out_elt"]),
    )

    if grid_k == 1:
        grid_spec = pltpu.PrefetchScalarGridSpec(
            num_scalar_prefetch=0,
            grid=(grid_m, grid_n),
            in_specs=[
                pl.BlockSpec((tm, tk), lambda i, j: (i, 0)),   # x
                pl.BlockSpec((tk, tn), lambda i, j: (0, j)),   # w
                pl.BlockSpec((1, tn), lambda i, j: (0, j)),    # bias
            ],
            out_specs=pl.BlockSpec((tm, tn), lambda i, j: (i, j)),
        )
        kernel = _linear_relu_fused_kernel
        dims = ("parallel", "parallel")
    else:
        grid_spec = pltpu.PrefetchScalarGridSpec(
            num_scalar_prefetch=0,
            grid=(grid_m, grid_n, grid_k),
            in_specs=[
                pl.BlockSpec((tm, tk), lambda i, j, k: (i, k)),  # x
                pl.BlockSpec((tk, tn), lambda i, j, k: (k, j)),  # w
                pl.BlockSpec((1, tn), lambda i, j, k: (0, j)),   # bias
            ],
            out_specs=pl.BlockSpec((tm, tn), lambda i, j, k: (i, j)),
            scratch_shapes=[pltpu.VMEM((tm, tn), jnp.float32)],
        )
        kernel = _linear_relu_acc_kernel
        dims = ("parallel", "parallel", "arbitrary")

    call = pl.pallas_call(
        kernel,
        out_shape=jax.ShapeDtypeStruct((Bp, Np), out_dtype),
        grid_spec=grid_spec,
        compiler_params=pltpu.CompilerParams(
            dimension_semantics=dims,
            vmem_limit_bytes=plan["vmem_limit"],
        ),
        cost_estimate=cost,
    )

    @functools.partial(jax.jit)
    def _fwd(x, wp, bp):
        xc = x.astype(compute_dtype)
        if (Bp, Kp) != (batch_size, K):     # static: skip pad when aligned
            xc = jnp.pad(xc, ((0, Bp - batch_size), (0, Kp - K)))
        out = call(xc, wp, bp)
        return out[:batch_size, :N]

    def forward(x):
        assert x.shape == (batch_size, K), (x.shape, (batch_size, K))
        return _fwd(x, wp, bp)

    return forward


def autoencoder_forward(x, w, b, **kwargs):
    """One-shot convenience wrapper (params prepared inside; prefer
    make_autoencoder_forward for repeated calls)."""
    return make_autoencoder_forward(w, b, x.shape[0], **kwargs)(x)


def _ref_forward(x, w, b):
    return jnp.maximum(x @ w + b, 0.0)


if __name__ == "__main__":
    # Small shapes consistent with the module: Linear(input_size, output_size).
    batch = 8
    input_size = 64
    output_size = 32

    key = jax.random.PRNGKey(0)
    kx, kw, kb = jax.random.split(key, 3)

    # Deterministic parameter init (PyTorch Linear-style uniform bound).
    bound = 1.0 / (input_size ** 0.5)
    # Stored already transposed: (input_size, output_size) == W_pt.T
    w = jax.random.uniform(kw, (input_size, output_size), jnp.float32,
                           minval=-bound, maxval=bound)
    b = jax.random.uniform(kb, (output_size,), jnp.float32,
                           minval=-bound, maxval=bound)
    x = jax.random.normal(kx, (batch, input_size), jnp.float32)

    y_ref = _ref_forward(x, w, b)

    # f32 compute path (matches PyTorch numerics): tight tolerance.
    fwd_f32 = make_autoencoder_forward(w, b, batch, compute_dtype=jnp.float32)
    y_f32 = jax.block_until_ready(fwd_f32(x))
    assert y_f32.shape == (batch, output_size)
    assert jnp.allclose(y_f32, y_ref, atol=1e-5, rtol=1e-5)

    # bf16 compute path (higher MXU throughput / half W traffic on v6e/v7x).
    fwd_bf16 = make_autoencoder_forward(w, b, batch, compute_dtype=jnp.bfloat16)
    y_bf16 = jax.block_until_ready(fwd_bf16(x))
    assert y_bf16.shape == (batch, output_size)
    assert jnp.allclose(y_bf16, y_ref, atol=5e-2, rtol=5e-2)

    print("KERNEL_OK")
</pallas_src>

<mosaic_0001>
module attributes {stable_mosaic.version = 11 : i64} {
  func.func @_linear_relu_fused_kernel(%arg0: i32, %arg1: i32, %arg2: memref<8x128xf32, #tpu.memory_space<vmem>>, %arg3: memref<128x128xf32, #tpu.memory_space<vmem>>, %arg4: memref<1x128xf32, #tpu.memory_space<vmem>>, %arg5: memref<8x128xf32, #tpu.memory_space<vmem>>) attributes {dimension_semantics = [#tpu.dimension_semantics<parallel>, #tpu.dimension_semantics<parallel>], iteration_bounds = array<i64: 1, 1>, scalar_prefetch = 0 : i64, scratch_operands = 0 : i64, tpu.core_type = #tpu.core_type<tc>, window_params = [{transform_indices = @transform_0, window_bounds = array<i64: 8, 128>}, {transform_indices = @transform_1, window_bounds = array<i64: 128, 128>}, {transform_indices = @transform_2, window_bounds = array<i64: 1, 128>}, {transform_indices = @transform_3, window_bounds = array<i64: 8, 128>}]} {
    %c0 = arith.constant 0 : index
    %c0_0 = arith.constant 0 : index
    %0 = vector.load %arg2[%c0, %c0_0] : memref<8x128xf32, #tpu.memory_space<vmem>>, vector<8x128xf32>
    %c0_1 = arith.constant 0 : index
    %c0_2 = arith.constant 0 : index
    %1 = vector.load %arg3[%c0_1, %c0_2] : memref<128x128xf32, #tpu.memory_space<vmem>>, vector<128x128xf32>
    %cst = arith.constant dense<0.000000e+00> : vector<8x128xf32>
    %2 = tpu.matmul %0, %1, %cst {dimension_numbers = #tpu.dot_dimension_numbers<[1], [0], [0], [1], [0, 0, 1, 1], [], []>} : vector<8x128xf32>, vector<128x128xf32>, vector<8x128xf32> -> vector<8x128xf32>
    %c0_3 = arith.constant 0 : index
    %c0_4 = arith.constant 0 : index
    %3 = vector.load %arg4[%c0_3, %c0_4] : memref<1x128xf32, #tpu.memory_space<vmem>>, vector<1x128xf32>
    %4 = vector.broadcast %3 : vector<1x128xf32> to vector<8x128xf32>
    %5 = arith.addf %2, %4 : vector<8x128xf32>
    %cst_5 = arith.constant 0.000000e+00 : f32
    %6 = vector.broadcast %cst_5 : f32 to vector<8x128xf32>
    %7 = arith.maximumf %5, %6 : vector<8x128xf32>
    %c0_6 = arith.constant 0 : index
    %c0_7 = arith.constant 0 : index
    %8 = vector.load %arg5[%c0_6, %c0_7] : memref<8x128xf32, #tpu.memory_space<vmem>>, vector<8x128xf32>
    tpu.vector_store %arg5[%c0_6, %c0_7], %7 {strides = array<i32>} : memref<8x128xf32, #tpu.memory_space<vmem>>, vector<8x128xf32>,
    return
  }
  func.func @transform_0(%arg0: i32, %arg1: i32) -> (i32, i32) {
    %c0_i32 = arith.constant 0 : i32
    %c0_i32_0 = arith.constant 0 : i32
    return %arg0, %c0_i32 : i32, i32
  }
  func.func @transform_1(%arg0: i32, %arg1: i32) -> (i32, i32) {
    %c0_i32 = arith.constant 0 : i32
    %c0_i32_0 = arith.constant 0 : i32
    return %c0_i32, %arg1 : i32, i32
  }
  func.func @transform_2(%arg0: i32, %arg1: i32) -> (i32, i32) {
    %c0_i32 = arith.constant 0 : i32
    %c0_i32_0 = arith.constant 0 : i32
    return %c0_i32, %arg1 : i32, i32
  }
  func.func @transform_3(%arg0: i32, %arg1: i32) -> (i32, i32) {
    %c0_i32 = arith.constant 0 : i32
    return %arg0, %arg1 : i32, i32
  }
}

</mosaic_0001>

<bundles_post_ra>
// kernel: _fwd.1
= control target key start
LH: loop header
LB: loop body
LE: loop exit
PB: predicated region body
PF: predicated region fallthrough
CT: control target
= control target key end

     0   :  { %8 = vsyncpa [#allocation3], 0  ;;  %s329_s0 = inlined_call_operand.vmem [shape: f32[8,128], index: 0, kind: input, shape index: {}]   ;;  %s330_s1 = inlined_call_operand.hbm [shape: f32[128,128], index: 1, kind: input, shape index: {}]   ;;  %s331_s2 = inlined_call_operand.vmem [shape: f32[1,128], index: 2, kind: input, shape index: {}]   ;;  %s332_s3 = inlined_call_operand.hbm [shape: f32[8,128], index: 3, kind: output, shape index: {}]  }
   0x1   :  { %9 = vsyncpa [#allocation4], 0  ;;  %s272_s12 = smov [#allocation2]   ;;  %s224_s16 = scalar_lea.hbm %s330_s1, 2048 }
   0x2   :  { %s17_s13 = sshll.u32 %s272_s12, 4  ;;  %p225_p0 = scmp.ne.s32.totalorder %s330_s1, %s224_s16  ;;  %s18_s13 = int_to_ptr.vmem [resolvable:$true] %s17_s13 }
   0x3   :  { %p228_p1 = scmp.lt.u32.totalorder %s224_s16, %s330_s1 }
   0x5   :  { %p230_p2 = pnand %p228_p1, %p225_p0 }
   0x7   :  { %233 = shalt.err (!%p230_p2)
}
   0x8   :  { %s234_s21 = scalar_lea.vmem %s18_s13, 2048  ;;  %p239_p4 = scmp.lt.s32.totalorder %s18_s13, %s18_s13 }
   0x9   :  { %p235_p3 = scmp.ne.s32.totalorder %s18_s13, %s234_s21  ;;  %p240_p5 = scmp.lt.s32.totalorder %s234_s21, %s234_s21 }
   0xb   :  { %p241_p6 = por %p240_p5, %p239_p4 }
   0xd   :  { %p242_p7 = pnand %p241_p6, %p235_p3 }
   0xf   :  { %245 = shalt.err (!%p242_p7)
}
  0x10   :  { %s273_s22 = smov 128   ;;  %s274_s23 = smov 8  }
  0x11   :  { %23 = dma.hbm_to_vmem [thread:$0]  %s330_s1, 2048, %s18_s13, [#allocation3], %s273_s22, %s273_s22, %s274_s23  }
  0x12   :  { %268 = dma.done.wait [#allocation3], 2048  }
  0x13   :  { %269 = vsyncadd [#allocation3], 4294965248  ;;  %v275_v0 = vmov 0.0|0.0   ;;  %vm276_vm0 = vmmov 0   ;;  %v277_v1 = vmov 0.0   ;;  %v30_v2 = vld [vmem:[#allocation2] sm:$0xff] }
  0x14   :  { %193 = vmatprep.subr.bf16.mxu0 %v275_v0  ;;  %190 = vmatprep.mubr.msk.f32.mxu0 %vm276_vm0, %v277_v1  ;;  %v31_v3 = vld [vmem:[#allocation2 + $0x8] sm:$0xff]  ;;  %v32_v4 = vld [vmem:[#allocation2 + $0x10] sm:$0xff]  ;;  %v33_v6 = vld [vmem:[#allocation2 + $0x18] sm:$0xff]  ;;  %s278_s29 = smov [#allocation5]  }
  0x15   :  { %v194_v5 = vpack.c.bf16 %v31_v3, %v30_v2  ;;  %v197_v7 = vpack.c.bf16 %v33_v6, %v32_v4  ;;  %v34_v8 = vld [vmem:[#allocation2 + $0x20] sm:$0xff]  ;;  %v35_v9 = vld [vmem:[#allocation2 + $0x28] sm:$0xff]  ;;  %v36_v11 = vld [vmem:[#allocation2 + $0x30] sm:$0xff]  ;;  %s131_s30 = sshll.u32 %s278_s29, 4  ;;  %s132_s30 = int_to_ptr.vmem [resolvable:$true] %s131_s30 }
  0x16   :  { %v200_v10 = vpack.c.bf16 %v35_v9, %v34_v8  ;;  %v37_v12 = vld [vmem:[#allocation2 + $0x38] sm:$0xff]  ;;  %v38_v14 = vld [vmem:[#allocation2 + $0x40] sm:$0xff]  ;;  %v39_v15 = vld [vmem:[#allocation2 + $0x48] sm:$0xff]  ;;  %s246_s4 = scalar_lea.vmem %s132_s30, 128  ;;  %p251_p9 = scmp.lt.s32.totalorder %s132_s30, %s132_s30 }
  0x17   :  { %195 = vmatpush3.bf16.msra.mxu0 %v194_v5  ;;  %v203_v13 = vpack.c.bf16 %v37_v12, %v36_v11  ;;  %v206_v16 = vpack.c.bf16 %v39_v15, %v38_v14  ;;  %v40_v17 = vld [vmem:[#allocation2 + $0x50] sm:$0xff]  ;;  %v41_v18 = vld [vmem:[#allocation2 + $0x58] sm:$0xff]  ;;  %v42_v20 = vld [vmem:[#allocation2 + $0x60] sm:$0xff]  ;;  %p247_p8 = scmp.ne.s32.totalorder %s132_s30, %s246_s4  ;;  %p252_p10 = scmp.lt.s32.totalorder %s246_s4, %s246_s4 }
  0x18   :  { %196 = vmatprep.subr.bf16.mxu0 %v275_v0  ;;  %v209_v19 = vpack.c.bf16 %v41_v18, %v40_v17  ;;  %v43_v21 = vld [vmem:[#allocation2 + $0x68] sm:$0xff]  ;;  %v44_v23 = vld [vmem:[#allocation2 + $0x70] sm:$0xff]  ;;  %v45_v24 = vld [vmem:[#allocation2 + $0x78] sm:$0xff] }
  0x19   :  { %v212_v22 = vpack.c.bf16 %v43_v21, %v42_v20  ;;  %v215_v25 = vpack.c.bf16 %v45_v24, %v44_v23  ;;  %v29_v26 = vld [vmem:[%s329_s0] sm:$0xff]  ;;  %p253_p11 = por %p252_p10, %p251_p9 }
  0x1a   :  { %v140_v27 = vld [vmem:[%s331_s2] ss:$0 sm:$0xff] }
  0x1b   :  { %198 = vmatpush3.bf16.msra.mxu0 %v197_v7  ;;  %p254_p12 = pnand %p253_p11, %p247_p8 }
  0x1c   :  { %199 = vmatprep.subr.bf16.mxu0 %v275_v0 }
  0x1f   :  { %201 = vmatpush3.bf16.msra.mxu0 %v200_v10 }
  0x20   :  { %202 = vmatprep.subr.bf16.mxu0 %v275_v0 }
  0x23   :  { %204 = vmatpush3.bf16.msra.mxu0 %v203_v13 }
  0x24   :  { %205 = vmatprep.subr.bf16.mxu0 %v275_v0 }
  0x27   :  { %207 = vmatpush3.bf16.msra.mxu0 %v206_v16 }
  0x28   :  { %208 = vmatprep.subr.bf16.mxu0 %v275_v0 }
  0x2b   :  { %210 = vmatpush3.bf16.msra.mxu0 %v209_v19 }
  0x2c   :  { %211 = vmatprep.subr.bf16.mxu0 %v275_v0 }
  0x2f   :  { %213 = vmatpush3.bf16.msra.mxu0 %v212_v22 }
  0x30   :  { %214 = vmatprep.subr.bf16.mxu0 %v275_v0 }
  0x33   :  { %216 = vmatpush3.bf16.msra.mxu0 %v215_v25 }
  0x36   :  { %191 = vmatmul.mubr.f32.vlgmr.msra.gmra.mrb[0].mxu0 %v29_v26 }
 0x109   :  { %v119_v28 = vpop.f32.mrb[0].mxu0 }
 0x10a   :  { %v120_v29 = vadd.f32 %v140_v27, %v119_v28  ;;  %v192_v30 = vpop.f32.mrb[1].mxu0 }
 0x10c   :  { %v123_v31 = vmax.f32 %v120_v29, 0.0 }
 0x10e   :  { %124 = vst [vmem:[#allocation5] sm:$0xff] %v123_v31 }
 0x10f   :  { %257 = shalt.err (!%p254_p12)
}
 0x110   :  { %s258_s6 = scalar_lea.hbm %s332_s3, 128 }
 0x111   :  { %p259_p13 = scmp.ne.s32.totalorder %s332_s3, %s258_s6  ;;  %p262_p0 = scmp.lt.u32.totalorder %s258_s6, %s332_s3 }
 0x113   :  { %p264_p1 = pnand %p262_p0, %p259_p13 }
 0x115   :  { %267 = shalt.err (!%p264_p1)
}
 0x116   :  { %134 = dma.vmem_to_hbm [thread:$0]  %s132_s30, 128, %s332_s3, [#allocation4]  }
 0x117   :  { %270 = dma.done.wait [#allocation4], 128  }
 0x118   :  { %271 = vsyncadd [#allocation4], 4294967168 }
 0x119   :  { %138 = vsyncpa [#allocation3], 1 }
 0x11a   :  { %139 = vsyncpa [#allocation4], 1 }

</bundles_post_ra>
